<compile_context>
chip_gen: v7x
topology: tpu7x:2x2x1
jax: 0.10.0
libtpu: 0.0.40
codegen_flags: <defaults>
</compile_context>

<pallas_src>
import functools

import numpy as np
import jax
import jax.numpy as jnp
from jax import lax
from jax.experimental import pallas as pl
from jax.experimental.pallas import tpu as pltpu


def _round_up(x, m):
    return ((x + m - 1) // m) * m


# ----------------------------- fused Pallas kernel ----------------------------

def _fused_sage_kernel(src_ref, seed_ref, feat_ref, w_ref, b_ref, o_ref, cat_sc,
                       *, tile_seeds, fanout, in_pad):
    """One grid step computes `tile_seeds` destination (seed) rows.

    src_ref : SMEM int32 [num_seeds_pad * fanout]    dst-major source-row id per edge
    seed_ref: SMEM int32 [num_seeds_pad]             frontier row id of each seed (h_self)
    feat_ref: VMEM       [num_frontier_pad, IN_PAD]  lane-padded, grid-invariant
    w_ref   : VMEM f32   [2*IN_PAD, OUT_PAD]         [w_neigh/fanout ; w_self] stacked on K
    b_ref   : VMEM f32   [1, OUT_PAD]                fc_self bias
    o_ref   : VMEM       [tile_seeds, OUT_PAD]       lane-dense output tile
    cat_sc  : VMEM f32   [tile_seeds, 2*IN_PAD]      K-concat [agg | self] scratch
    """
    seed_base = pl.multiple_of(pl.program_id(0) * tile_seeds, tile_seeds)

    # Sublane-selection masks for register stacking of 8 rows (hoisted: loop invariant).
    row_id = lax.broadcasted_iota(jnp.int32, (8, in_pad), 0)
    sel_masks = [row_id == d for d in range(8)]

    def per_group(grp, carry):
        base = pl.multiple_of(grp * 8, 8)
        agg8 = jnp.zeros((8, in_pad), jnp.float32)
        self8 = jnp.zeros((8, in_pad), jnp.float32)
        for d in range(8):                           # static unroll over the 8 sublanes
            g = seed_base + base + d
            # h_self row gather (one (1, IN_PAD) lane-dense load).
            srow = seed_ref[g]
            self_row = feat_ref[pl.ds(srow, 1), :].astype(jnp.float32)
            # Segmented sum over this destination's `fanout` consecutive source rows,
            # accumulated in registers (no per-edge read-modify-write of VMEM).
            ebase = g * fanout
            acc = feat_ref[pl.ds(src_ref[ebase], 1), :].astype(jnp.float32)
            if fanout <= 16:                          # small fanout: static unroll
                for j in range(1, fanout):
                    acc = acc + feat_ref[pl.ds(src_ref[ebase + j], 1), :].astype(jnp.float32)
            else:
                def add_src(j, a):
                    return a + feat_ref[pl.ds(src_ref[ebase + j], 1), :].astype(jnp.float32)
                acc = lax.fori_loop(1, fanout, add_src, acc)
            # Stack into the group's 8 sublanes in registers (cheap VPU selects).
            agg8 = jnp.where(sel_masks[d], jnp.broadcast_to(acc, (8, in_pad)), agg8)
            self8 = jnp.where(sel_masks[d], jnp.broadcast_to(self_row, (8, in_pad)), self8)
        # Two full-sublane, lane-dense (8, IN_PAD) unmasked stores per group.
        cat_sc[pl.ds(base, 8), pl.ds(0, in_pad)] = agg8
        cat_sc[pl.ds(base, 8), pl.ds(in_pad, in_pad)] = self8
        return carry

    lax.fori_loop(0, tile_seeds // 8, per_group, 0)

    # Single fused MXU pass:
    #   out = [sum_src(feat) | h_self] @ [[w_neigh / fanout], [w_self]] + bias
    h = jnp.dot(cat_sc[...], w_ref[...], preferred_element_type=jnp.float32)
    o_ref[...] = (h + b_ref[...]).astype(o_ref.dtype)


# ----------------------------- MPSAGEConv forward -----------------------------

def mpsage_conv_forward(graph, feat, params, in_feats, out_feats, *, tile_seeds=512):
    """graph = (all_coo_row, all_coo_col, recv_frontier_size, recv_coo_size,
    recv_seed_size); index/size arrays are host numpy (static glue)."""
    all_coo_row, all_coo_col, recv_frontier_size, recv_coo_size, recv_seed_size = graph
    w_neigh_t, w_self_t, b_self = params          # pre-transposed: [in_feats, out_feats]

    num_parts = len(recv_seed_size)
    frontier_offset = np.concatenate([[0], np.cumsum(recv_frontier_size)]).astype(np.int64)
    coo_offset = np.concatenate([[0], np.cumsum(recv_coo_size)]).astype(np.int64)
    seed_offset = np.concatenate([[0], np.cumsum(recv_seed_size)]).astype(np.int64)
    num_seeds = int(recv_seed_size.sum())
    num_edges = int(all_coo_row.shape[0])
    assert num_seeds > 0 and num_edges % num_seeds == 0, (
        "mean aggregation assumes a uniform fanout per seed")
    fanout = num_edges // num_seeds
    assert fanout > 0

    # feat_drop(p=0.0) is the identity.
    # TODO(synk): dropout with p > 0 not implemented (module default is p=0.0).

    # h_self row ids: first recv_seed_size[i] rows of each frontier block.
    seed_rows = np.concatenate([
        np.arange(frontier_offset[i], frontier_offset[i] + recv_seed_size[i])
        for i in range(num_parts)
    ]).astype(np.int32)

    # Per-partition local edge indices -> global row indices (host glue).
    global_src = np.concatenate([
        frontier_offset[p] + all_coo_row[coo_offset[p]:coo_offset[p + 1]]
        for p in range(num_parts)
    ]).astype(np.int32)
    global_dst = np.concatenate([
        seed_offset[p] + all_coo_col[coo_offset[p]:coo_offset[p + 1]]
        for p in range(num_parts)
    ]).astype(np.int64)

    # The segment-sum kernel needs dst-major ordering with exactly `fanout` consecutive
    # edges per destination.  If the incoming COO is ordered differently, sort on host.
    expected_dst = np.repeat(np.arange(num_seeds, dtype=np.int64), fanout)
    if not np.array_equal(global_dst, expected_dst):
        order = np.argsort(global_dst, kind="stable")
        global_src = global_src[order]
        assert np.array_equal(global_dst[order], expected_dst), (
            "non-uniform per-destination in-degree; uniform-fanout assumption violated")
        # TODO(synk): keep a general scatter-add fallback for non-uniform in-degree graphs.

    # --- lane/sublane padding -----------------------------------------------------
    IN_PAD = _round_up(max(in_feats, 1), 128)        # lane-dense gathered rows / MXU K
    OUT_PAD = _round_up(max(out_feats, 1), 128)      # lane-dense output stores / MXU N
    tile = _round_up(min(tile_seeds, _round_up(num_seeds, 8)), 8)
    num_seeds_pad = _round_up(num_seeds, tile)
    grid = (num_seeds_pad // tile,)

    seed_rows_p = np.zeros((num_seeds_pad,), np.int32)
    seed_rows_p[:num_seeds] = seed_rows
    src_p = np.zeros((num_seeds_pad * fanout,), np.int32)   # pad points at row 0 (valid)
    src_p[:num_edges] = global_src

    num_frontier = int(feat.shape[0])
    num_frontier_pad = _round_up(max(num_frontier, 8), 8)
    feat_pad = jnp.zeros((num_frontier_pad, IN_PAD), feat.dtype)
    feat_pad = feat_pad.at[:num_frontier, :in_feats].set(feat)

    f32 = jnp.float32
    # K-stacked weight: rows [0, in_feats) = w_neigh / fanout ; rows [IN_PAD, IN_PAD+in_feats) = w_self.
    w_cat = jnp.zeros((2 * IN_PAD, OUT_PAD), f32)
    w_cat = w_cat.at[:in_feats, :out_feats].set(
        jnp.asarray(w_neigh_t, f32) * (1.0 / float(fanout)))   # fold mean into the weight
    w_cat = w_cat.at[IN_PAD:IN_PAD + in_feats, :out_feats].set(jnp.asarray(w_self_t, f32))
    b_pad = jnp.zeros((1, OUT_PAD), f32).at[:, :out_feats].set(
        jnp.reshape(jnp.asarray(b_self, f32), (1, out_feats)))

    itemsize = int(np.dtype(feat.dtype).itemsize)
    vmem_need = (num_frontier_pad * IN_PAD * itemsize        # resident lane-padded feat
                 + 2 * IN_PAD * OUT_PAD * 4                  # stacked weight
                 + OUT_PAD * 4                               # bias
                 + 2 * tile * OUT_PAD * itemsize             # double-buffered out tile
                 + tile * 2 * IN_PAD * 4)                    # K-concat scratch
    try:
        info = pltpu.get_tpu_info()
        vmem_cap = int(getattr(info, "vmem_capacity_bytes", 64 << 20))
    except Exception:  # pragma: no cover - conservative fallback
        vmem_cap = 64 << 20
    # ~48 MiB ceiling on v7x (64 MiB VMEM), ~96 MiB on v5e/v6e (128 MiB VMEM).
    vmem_ceiling = max(32 << 20, int(0.75 * vmem_cap))
    vmem_limit = int(min(max(2 * vmem_need, 32 << 20), vmem_ceiling))
    # TODO(synk): if the frontier does not fit the budget, stream feat row-chunks via
    # manual DMA gather and stream edge-id chunks instead of one scalar-prefetch array.

    kernel = functools.partial(_fused_sage_kernel,
                               tile_seeds=tile, fanout=fanout, in_pad=IN_PAD)
    out_pad = pl.pallas_call(
        kernel,
        out_shape=jax.ShapeDtypeStruct((num_seeds_pad, OUT_PAD), feat.dtype),
        grid_spec=pltpu.PrefetchScalarGridSpec(
            num_scalar_prefetch=2,
            grid=grid,
            in_specs=[
                pl.BlockSpec((num_frontier_pad, IN_PAD), lambda i, src, seed: (0, 0)),  # feat
                pl.BlockSpec((2 * IN_PAD, OUT_PAD), lambda i, src, seed: (0, 0)),       # W stack
                pl.BlockSpec((1, OUT_PAD), lambda i, src, seed: (0, 0)),                # bias
            ],
            out_specs=pl.BlockSpec((tile, OUT_PAD), lambda i, src, seed: (i, 0)),
            scratch_shapes=[
                pltpu.VMEM((tile, 2 * IN_PAD), jnp.float32),   # [agg | self] K-concat tile
            ],
        ),
        compiler_params=pltpu.CompilerParams(
            dimension_semantics=("parallel",),   # shard seed tiles across v7x's 2 TCs
            vmem_limit_bytes=vmem_limit,
        ),
    )(jnp.asarray(src_p), jnp.asarray(seed_rows_p), feat_pad, w_cat, b_pad)

    # Slice off the seed-row and lane padding.
    return out_pad[:num_seeds, :out_feats]


# ----------------------------- reference (pure JAX) ----------------------------

def reference_forward(graph, feat, params, in_feats, out_feats):
    all_coo_row, all_coo_col, recv_frontier_size, recv_coo_size, recv_seed_size = graph
    w_neigh_t, w_self_t, b_self = params
    num_parts = len(recv_seed_size)
    frontier_offset = np.concatenate([[0], np.cumsum(recv_frontier_size)])
    coo_offset = np.concatenate([[0], np.cumsum(recv_coo_size)])
    seed_offset = np.concatenate([[0], np.cumsum(recv_seed_size)])
    num_seeds = int(recv_seed_size.sum())
    fanout = all_coo_row.shape[0] // num_seeds

    seed_rows = np.concatenate([
        np.arange(frontier_offset[i], frontier_offset[i] + recv_seed_size[i])
        for i in range(num_parts)
    ])
    global_src = np.concatenate([
        frontier_offset[p] + all_coo_row[coo_offset[p]:coo_offset[p + 1]]
        for p in range(num_parts)
    ])
    global_dst = np.concatenate([
        seed_offset[p] + all_coo_col[coo_offset[p]:coo_offset[p + 1]]
        for p in range(num_parts)
    ])

    h_self = feat[jnp.asarray(seed_rows)]
    if in_feats > out_feats:
        h_inputs = feat @ w_neigh_t
        agg = jnp.zeros((num_seeds, out_feats), feat.dtype)
        agg = agg.at[jnp.asarray(global_dst)].add(h_inputs[jnp.asarray(global_src)])
        h_neigh = agg / fanout
    else:
        agg = jnp.zeros((num_seeds, in_feats), feat.dtype)
        agg = agg.at[jnp.asarray(global_dst)].add(feat[jnp.asarray(global_src)])
        h_neigh = (agg / fanout) @ w_neigh_t
    return h_self @ w_self_t + b_self + h_neigh


# ----------------------------- main --------------------------------------------

if __name__ == "__main__":
    in_feats, out_feats = 32, 16          # in > out  ->  lin_before_mp = True in torch
    num_parts = 2
    recv_frontier_size = np.array([12, 10], dtype=np.int64)
    recv_seed_size = np.array([4, 3], dtype=np.int64)
    fanout = 3
    recv_coo_size = recv_seed_size * fanout

    key = jax.random.PRNGKey(0)
    k_feat, k_wn, k_ws, k_b, k_edges = jax.random.split(key, 5)

    num_frontier = int(recv_frontier_size.sum())
    feat = jax.random.normal(k_feat, (num_frontier, in_feats), dtype=jnp.float32)

    # Parameter init matching reset_parameters(): xavier_uniform with gain('relu')=sqrt(2).
    gain = np.sqrt(2.0)
    bound = gain * np.sqrt(6.0 / (in_feats + out_feats))
    w_neigh = jax.random.uniform(k_wn, (out_feats, in_feats), jnp.float32, -bound, bound)
    w_self = jax.random.uniform(k_ws, (out_feats, in_feats), jnp.float32, -bound, bound)
    # fc_self bias keeps nn.Linear default init: U(-1/sqrt(in), 1/sqrt(in)).
    b_bound = 1.0 / np.sqrt(in_feats)
    b_self = jax.random.uniform(k_b, (1, out_feats), jnp.float32, -b_bound, b_bound)
    params = (jnp.transpose(w_neigh), jnp.transpose(w_self), b_self)

    # Deterministic synthetic partitioned COO graph (local indices, dst-major).
    rows, cols = [], []
    ek = k_edges
    for p in range(num_parts):
        for j in range(int(recv_seed_size[p])):
            ek, sub = jax.random.split(ek)
            r = jax.random.randint(sub, (fanout,), 0, int(recv_frontier_size[p]))
            rows.append(np.asarray(r, dtype=np.int32))
            cols.append(np.full((fanout,), j, dtype=np.int32))
    all_coo_row = np.concatenate(rows)
    all_coo_col = np.concatenate(cols)
    graph = (all_coo_row, all_coo_col, recv_frontier_size, recv_coo_size, recv_seed_size)

    out = mpsage_conv_forward(graph, feat, params, in_feats, out_feats)
    out = jax.block_until_ready(out)

    ref = reference_forward(graph, feat, params, in_feats, out_feats)
    np.testing.assert_allclose(np.asarray(out), np.asarray(ref), rtol=1e-4, atol=1e-4)

    print("KERNEL_OK")
</pallas_src>

<mosaic_0001>
module attributes {stable_mosaic.version = 11 : i64} {
  func.func @_fused_sage_kernel(%arg0: i32, %arg1: memref<24xi32, #tpu.memory_space<smem>>, %arg2: memref<8xi32, #tpu.memory_space<smem>>, %arg3: memref<24x128xf32, #tpu.memory_space<vmem>>, %arg4: memref<256x128xf32, #tpu.memory_space<vmem>>, %arg5: memref<1x128xf32, #tpu.memory_space<vmem>>, %arg6: memref<8x128xf32, #tpu.memory_space<vmem>>, %arg7: memref<8x256xf32, #tpu.memory_space<vmem>>) attributes {dimension_semantics = [#tpu.dimension_semantics<parallel>], iteration_bounds = array<i64: 1>, scalar_prefetch = 2 : i64, scratch_operands = 1 : i64, tpu.core_type = #tpu.core_type<tc>, window_params = [{pipeline_mode = #tpu.pipeline_mode<synchronous>, transform_indices = @transform_0, window_bounds = array<i64: 24, 128>}, {pipeline_mode = #tpu.pipeline_mode<synchronous>, transform_indices = @transform_1, window_bounds = array<i64: 256, 128>}, {pipeline_mode = #tpu.pipeline_mode<synchronous>, transform_indices = @transform_2, window_bounds = array<i64: 1, 128>}, {transform_indices = @transform_3, window_bounds = array<i64: 8, 128>}]} {
    %c8_i32 = arith.constant 8 : i32
    %0 = arith.muli %arg0, %c8_i32 : i32
    %1 = tpu.assume_multiple %0, 8 : i32
    %2 = tpu.iota {dimensions = array<i32: 0>} : vector<8x128xi32>
    %c0_i32 = arith.constant 0 : i32
    %3 = vector.broadcast %c0_i32 : i32 to vector<8x128xi32>
    %4 = arith.cmpi eq, %2, %3 : vector<8x128xi32>
    %c1_i32 = arith.constant 1 : i32
    %5 = vector.broadcast %c1_i32 : i32 to vector<8x128xi32>
    %6 = arith.cmpi eq, %2, %5 : vector<8x128xi32>
    %c2_i32 = arith.constant 2 : i32
    %7 = vector.broadcast %c2_i32 : i32 to vector<8x128xi32>
    %8 = arith.cmpi eq, %2, %7 : vector<8x128xi32>
    %c3_i32 = arith.constant 3 : i32
    %9 = vector.broadcast %c3_i32 : i32 to vector<8x128xi32>
    %10 = arith.cmpi eq, %2, %9 : vector<8x128xi32>
    %c4_i32 = arith.constant 4 : i32
    %11 = vector.broadcast %c4_i32 : i32 to vector<8x128xi32>
    %12 = arith.cmpi eq, %2, %11 : vector<8x128xi32>
    %c5_i32 = arith.constant 5 : i32
    %13 = vector.broadcast %c5_i32 : i32 to vector<8x128xi32>
    %14 = arith.cmpi eq, %2, %13 : vector<8x128xi32>
    %c6_i32 = arith.constant 6 : i32
    %15 = vector.broadcast %c6_i32 : i32 to vector<8x128xi32>
    %16 = arith.cmpi eq, %2, %15 : vector<8x128xi32>
    %c7_i32 = arith.constant 7 : i32
    %17 = vector.broadcast %c7_i32 : i32 to vector<8x128xi32>
    %18 = arith.cmpi eq, %2, %17 : vector<8x128xi32>
    %c0_i32_0 = arith.constant 0 : i32
    %c8_i32_1 = arith.constant 8 : i32
    %19 = arith.muli %c0_i32_0, %c8_i32_1 : i32
    %20 = tpu.assume_multiple %19, 8 : i32
    %cst = arith.constant 0.000000e+00 : f32
    %21 = vector.broadcast %cst : f32 to vector<8x128xf32>
    %cst_2 = arith.constant 0.000000e+00 : f32
    %22 = vector.broadcast %cst_2 : f32 to vector<8x128xf32>
    %23 = arith.addi %1, %20 : i32
    %c0_i32_3 = arith.constant 0 : i32
    %24 = arith.addi %23, %c0_i32_3 : i32
    %25 = arith.index_cast %24 : i32 to index
    %26 = memref.load %arg2[%25] : memref<8xi32, #tpu.memory_space<smem>>
    %27 = arith.index_cast %26 : i32 to index
    %c0 = arith.constant 0 : index
    %28 = vector.load %arg3[%27, %c0] : memref<24x128xf32, #tpu.memory_space<vmem>>, vector<1x128xf32>
    %c3_i32_4 = arith.constant 3 : i32
    %29 = arith.muli %24, %c3_i32_4 : i32
    %30 = arith.index_cast %29 : i32 to index
    %31 = memref.load %arg1[%30] : memref<24xi32, #tpu.memory_space<smem>>
    %32 = arith.index_cast %31 : i32 to index
    %c0_5 = arith.constant 0 : index
    %33 = vector.load %arg3[%32, %c0_5] : memref<24x128xf32, #tpu.memory_space<vmem>>, vector<1x128xf32>
    %c1_i32_6 = arith.constant 1 : i32
    %34 = arith.addi %29, %c1_i32_6 : i32
    %35 = arith.index_cast %34 : i32 to index
    %36 = memref.load %arg1[%35] : memref<24xi32, #tpu.memory_space<smem>>
    %37 = arith.index_cast %36 : i32 to index
    %c0_7 = arith.constant 0 : index
    %38 = vector.load %arg3[%37, %c0_7] : memref<24x128xf32, #tpu.memory_space<vmem>>, vector<1x128xf32>
    %39 = arith.addf %33, %38 : vector<1x128xf32>
    %c2_i32_8 = arith.constant 2 : i32
    %40 = arith.addi %29, %c2_i32_8 : i32
    %41 = arith.index_cast %40 : i32 to index
    %42 = memref.load %arg1[%41] : memref<24xi32, #tpu.memory_space<smem>>
    %43 = arith.index_cast %42 : i32 to index
    %c0_9 = arith.constant 0 : index
    %44 = vector.load %arg3[%43, %c0_9] : memref<24x128xf32, #tpu.memory_space<vmem>>, vector<1x128xf32>
    %45 = arith.addf %39, %44 : vector<1x128xf32>
    %46 = vector.shape_cast %45 : vector<1x128xf32> to vector<1x128xf32>
    %47 = vector.broadcast %46 : vector<1x128xf32> to vector<8x128xf32>
    %48 = arith.select %4, %47, %21 : vector<8x128xi1>, vector<8x128xf32>
    %49 = vector.shape_cast %28 : vector<1x128xf32> to vector<1x128xf32>
    %50 = vector.broadcast %49 : vector<1x128xf32> to vector<8x128xf32>
    %51 = arith.select %4, %50, %22 : vector<8x128xi1>, vector<8x128xf32>
    %52 = arith.addi %1, %20 : i32
    %c1_i32_10 = arith.constant 1 : i32
    %53 = arith.addi %52, %c1_i32_10 : i32
    %54 = arith.index_cast %53 : i32 to index
    %55 = memref.load %arg2[%54] : memref<8xi32, #tpu.memory_space<smem>>
    %56 = arith.index_cast %55 : i32 to index
    %c0_11 = arith.constant 0 : index
    %57 = vector.load %arg3[%56, %c0_11] : memref<24x128xf32, #tpu.memory_space<vmem>>, vector<1x128xf32>
    %c3_i32_12 = arith.constant 3 : i32
    %58 = arith.muli %53, %c3_i32_12 : i32
    %59 = arith.index_cast %58 : i32 to index
    %60 = memref.load %arg1[%59] : memref<24xi32, #tpu.memory_space<smem>>
    %61 = arith.index_cast %60 : i32 to index
    %c0_13 = arith.constant 0 : index
    %62 = vector.load %arg3[%61, %c0_13] : memref<24x128xf32, #tpu.memory_space<vmem>>, vector<1x128xf32>
    %c1_i32_14 = arith.constant 1 : i32
    %63 = arith.addi %58, %c1_i32_14 : i32
    %64 = arith.index_cast %63 : i32 to index
    %65 = memref.load %arg1[%64] : memref<24xi32, #tpu.memory_space<smem>>
    %66 = arith.index_cast %65 : i32 to index
    %c0_15 = arith.constant 0 : index
    %67 = vector.load %arg3[%66, %c0_15] : memref<24x128xf32, #tpu.memory_space<vmem>>, vector<1x128xf32>
    %68 = arith.addf %62, %67 : vector<1x128xf32>
    %c2_i32_16 = arith.constant 2 : i32
    %69 = arith.addi %58, %c2_i32_16 : i32
    %70 = arith.index_cast %69 : i32 to index
    %71 = memref.load %arg1[%70] : memref<24xi32, #tpu.memory_space<smem>>
    %72 = arith.index_cast %71 : i32 to index
    %c0_17 = arith.constant 0 : index
    %73 = vector.load %arg3[%72, %c0_17] : memref<24x128xf32, #tpu.memory_space<vmem>>, vector<1x128xf32>
    %74 = arith.addf %68, %73 : vector<1x128xf32>
    %75 = vector.shape_cast %74 : vector<1x128xf32> to vector<1x128xf32>
    %76 = vector.broadcast %75 : vector<1x128xf32> to vector<8x128xf32>
    %77 = arith.select %6, %76, %48 : vector<8x128xi1>, vector<8x128xf32>
    %78 = vector.shape_cast %57 : vector<1x128xf32> to vector<1x128xf32>
    %79 = vector.broadcast %78 : vector<1x128xf32> to vector<8x128xf32>
    %80 = arith.select %6, %79, %51 : vector<8x128xi1>, vector<8x128xf32>
    %81 = arith.addi %1, %20 : i32
    %c2_i32_18 = arith.constant 2 : i32
    %82 = arith.addi %81, %c2_i32_18 : i32
    %83 = arith.index_cast %82 : i32 to index
    %84 = memref.load %arg2[%83] : memref<8xi32, #tpu.memory_space<smem>>
    %85 = arith.index_cast %84 : i32 to index
    %c0_19 = arith.constant 0 : index
    %86 = vector.load %arg3[%85, %c0_19] : memref<24x128xf32, #tpu.memory_space<vmem>>, vector<1x128xf32>
    %c3_i32_20 = arith.constant 3 : i32
    %87 = arith.muli %82, %c3_i32_20 : i32
    %88 = arith.index_cast %87 : i32 to index
    %89 = memref.load %arg1[%88] : memref<24xi32, #tpu.memory_space<smem>>
    %90 = arith.index_cast %89 : i32 to index
    %c0_21 = arith.constant 0 : index
    %91 = vector.load %arg3[%90, %c0_21] : memref<24x128xf32, #tpu.memory_space<vmem>>, vector<1x128xf32>
    %c1_i32_22 = arith.constant 1 : i32
    %92 = arith.addi %87, %c1_i32_22 : i32
    %93 = arith.index_cast %92 : i32 to index
    %94 = memref.load %arg1[%93] : memref<24xi32, #tpu.memory_space<smem>>
    %95 = arith.index_cast %94 : i32 to index
    %c0_23 = arith.constant 0 : index
    %96 = vector.load %arg3[%95, %c0_23] : memref<24x128xf32, #tpu.memory_space<vmem>>, vector<1x128xf32>
    %97 = arith.addf %91, %96 : vector<1x128xf32>
    %c2_i32_24 = arith.constant 2 : i32
    %98 = arith.addi %87, %c2_i32_24 : i32
    %99 = arith.index_cast %98 : i32 to index
    %100 = memref.load %arg1[%99] : memref<24xi32, #tpu.memory_space<smem>>
    %101 = arith.index_cast %100 : i32 to index
    %c0_25 = arith.constant 0 : index
    %102 = vector.load %arg3[%101, %c0_25] : memref<24x128xf32, #tpu.memory_space<vmem>>, vector<1x128xf32>
    %103 = arith.addf %97, %102 : vector<1x128xf32>
    %104 = vector.shape_cast %103 : vector<1x128xf32> to vector<1x128xf32>
    %105 = vector.broadcast %104 : vector<1x128xf32> to vector<8x128xf32>
    %106 = arith.select %8, %105, %77 : vector<8x128xi1>, vector<8x128xf32>
    %107 = vector.shape_cast %86 : vector<1x128xf32> to vector<1x128xf32>
    %108 = vector.broadcast %107 : vector<1x128xf32> to vector<8x128xf32>
    %109 = arith.select %8, %108, %80 : vector<8x128xi1>, vector<8x128xf32>
    %110 = arith.addi %1, %20 : i32
    %c3_i32_26 = arith.constant 3 : i32
    %111 = arith.addi %110, %c3_i32_26 : i32
    %112 = arith.index_cast %111 : i32 to index
    %113 = memref.load %arg2[%112] : memref<8xi32, #tpu.memory_space<smem>>
    %114 = arith.index_cast %113 : i32 to index
    %c0_27 = arith.constant 0 : index
    %115 = vector.load %arg3[%114, %c0_27] : memref<24x128xf32, #tpu.memory_space<vmem>>, vector<1x128xf32>
    %c3_i32_28 = arith.constant 3 : i32
    %116 = arith.muli %111, %c3_i32_28 : i32
    %117 = arith.index_cast %116 : i32 to index
    %118 = memref.load %arg1[%117] : memref<24xi32, #tpu.memory_space<smem>>
    %119 = arith.index_cast %118 : i32 to index
    %c0_29 = arith.constant 0 : index
    %120 = vector.load %arg3[%119, %c0_29] : memref<24x128xf32, #tpu.memory_space<vmem>>, vector<1x128xf32>
    %c1_i32_30 = arith.constant 1 : i32
    %121 = arith.addi %116, %c1_i32_30 : i32
    %122 = arith.index_cast %121 : i32 to index
    %123 = memref.load %arg1[%122] : memref<24xi32, #tpu.memory_space<smem>>
    %124 = arith.index_cast %123 : i32 to index
    %c0_31 = arith.constant 0 : index
    %125 = vector.load %arg3[%124, %c0_31] : memref<24x128xf32, #tpu.memory_space<vmem>>, vector<1x128xf32>
    %126 = arith.addf %120, %125 : vector<1x128xf32>
    %c2_i32_32 = arith.constant 2 : i32
    %127 = arith.addi %116, %c2_i32_32 : i32
    %128 = arith.index_cast %127 : i32 to index
    %129 = memref.load %arg1[%128] : memref<24xi32, #tpu.memory_space<smem>>
    %130 = arith.index_cast %129 : i32 to index
    %c0_33 = arith.constant 0 : index
    %131 = vector.load %arg3[%130, %c0_33] : memref<24x128xf32, #tpu.memory_space<vmem>>, vector<1x128xf32>
    %132 = arith.addf %126, %131 : vector<1x128xf32>
    %133 = vector.shape_cast %132 : vector<1x128xf32> to vector<1x128xf32>
    %134 = vector.broadcast %133 : vector<1x128xf32> to vector<8x128xf32>
    %135 = arith.select %10, %134, %106 : vector<8x128xi1>, vector<8x128xf32>
    %136 = vector.shape_cast %115 : vector<1x128xf32> to vector<1x128xf32>
    %137 = vector.broadcast %136 : vector<1x128xf32> to vector<8x128xf32>
    %138 = arith.select %10, %137, %109 : vector<8x128xi1>, vector<8x128xf32>
    %139 = arith.addi %1, %20 : i32
    %c4_i32_34 = arith.constant 4 : i32
    %140 = arith.addi %139, %c4_i32_34 : i32
    %141 = arith.index_cast %140 : i32 to index
    %142 = memref.load %arg2[%141] : memref<8xi32, #tpu.memory_space<smem>>
    %143 = arith.index_cast %142 : i32 to index
    %c0_35 = arith.constant 0 : index
    %144 = vector.load %arg3[%143, %c0_35] : memref<24x128xf32, #tpu.memory_space<vmem>>, vector<1x128xf32>
    %c3_i32_36 = arith.constant 3 : i32
    %145 = arith.muli %140, %c3_i32_36 : i32
    %146 = arith.index_cast %145 : i32 to index
    %147 = memref.load %arg1[%146] : memref<24xi32, #tpu.memory_space<smem>>
    %148 = arith.index_cast %147 : i32 to index
    %c0_37 = arith.constant 0 : index
    %149 = vector.load %arg3[%148, %c0_37] : memref<24x128xf32, #tpu.memory_space<vmem>>, vector<1x128xf32>
    %c1_i32_38 = arith.constant 1 : i32
    %150 = arith.addi %145, %c1_i32_38 : i32
    %151 = arith.index_cast %150 : i32 to index
    %152 = memref.load %arg1[%151] : memref<24xi32, #tpu.memory_space<smem>>
    %153 = arith.index_cast %152 : i32 to index
    %c0_39 = arith.constant 0 : index
    %154 = vector.load %arg3[%153, %c0_39] : memref<24x128xf32, #tpu.memory_space<vmem>>, vector<1x128xf32>
    %155 = arith.addf %149, %154 : vector<1x128xf32>
    %c2_i32_40 = arith.constant 2 : i32
    %156 = arith.addi %145, %c2_i32_40 : i32
    %157 = arith.index_cast %156 : i32 to index
    %158 = memref.load %arg1[%157] : memref<24xi32, #tpu.memory_space<smem>>
    %159 = arith.index_cast %158 : i32 to index
    %c0_41 = arith.constant 0 : index
    %160 = vector.load %arg3[%159, %c0_41] : memref<24x128xf32, #tpu.memory_space<vmem>>, vector<1x128xf32>
    %161 = arith.addf %155, %160 : vector<1x128xf32>
    %162 = vector.shape_cast %161 : vector<1x128xf32> to vector<1x128xf32>
    %163 = vector.broadcast %162 : vector<1x128xf32> to vector<8x128xf32>
    %164 = arith.select %12, %163, %135 : vector<8x128xi1>, vector<8x128xf32>
    %165 = vector.shape_cast %144 : vector<1x128xf32> to vector<1x128xf32>
    %166 = vector.broadcast %165 : vector<1x128xf32> to vector<8x128xf32>
    %167 = arith.select %12, %166, %138 : vector<8x128xi1>, vector<8x128xf32>
    %168 = arith.addi %1, %20 : i32
    %c5_i32_42 = arith.constant 5 : i32
    %169 = arith.addi %168, %c5_i32_42 : i32
    %170 = arith.index_cast %169 : i32 to index
    %171 = memref.load %arg2[%170] : memref<8xi32, #tpu.memory_space<smem>>
    %172 = arith.index_cast %171 : i32 to index
    %c0_43 = arith.constant 0 : index
    %173 = vector.load %arg3[%172, %c0_43] : memref<24x128xf32, #tpu.memory_space<vmem>>, vector<1x128xf32>
    %c3_i32_44 = arith.constant 3 : i32
    %174 = arith.muli %169, %c3_i32_44 : i32
    %175 = arith.index_cast %174 : i32 to index
    %176 = memref.load %arg1[%175] : memref<24xi32, #tpu.memory_space<smem>>
    %177 = arith.index_cast %176 : i32 to index
    %c0_45 = arith.constant 0 : index
    %178 = vector.load %arg3[%177, %c0_45] : memref<24x128xf32, #tpu.memory_space<vmem>>, vector<1x128xf32>
    %c1_i32_46 = arith.constant 1 : i32
    %179 = arith.addi %174, %c1_i32_46 : i32
    %180 = arith.index_cast %179 : i32 to index
    %181 = memref.load %arg1[%180] : memref<24xi32, #tpu.memory_space<smem>>
    %182 = arith.index_cast %181 : i32 to index
    %c0_47 = arith.constant 0 : index
    %183 = vector.load %arg3[%182, %c0_47] : memref<24x128xf32, #tpu.memory_space<vmem>>, vector<1x128xf32>
    %184 = arith.addf %178, %183 : vector<1x128xf32>
    %c2_i32_48 = arith.constant 2 : i32
    %185 = arith.addi %174, %c2_i32_48 : i32
    %186 = arith.index_cast %185 : i32 to index
    %187 = memref.load %arg1[%186] : memref<24xi32, #tpu.memory_space<smem>>
    %188 = arith.index_cast %187 : i32 to index
    %c0_49 = arith.constant 0 : index
    %189 = vector.load %arg3[%188, %c0_49] : memref<24x128xf32, #tpu.memory_space<vmem>>, vector<1x128xf32>
    %190 = arith.addf %184, %189 : vector<1x128xf32>
    %191 = vector.shape_cast %190 : vector<1x128xf32> to vector<1x128xf32>
    %192 = vector.broadcast %191 : vector<1x128xf32> to vector<8x128xf32>
    %193 = arith.select %14, %192, %164 : vector<8x128xi1>, vector<8x128xf32>
    %194 = vector.shape_cast %173 : vector<1x128xf32> to vector<1x128xf32>
    %195 = vector.broadcast %194 : vector<1x128xf32> to vector<8x128xf32>
    %196 = arith.select %14, %195, %167 : vector<8x128xi1>, vector<8x128xf32>
    %197 = arith.addi %1, %20 : i32
    %c6_i32_50 = arith.constant 6 : i32
    %198 = arith.addi %197, %c6_i32_50 : i32
    %199 = arith.index_cast %198 : i32 to index
    %200 = memref.load %arg2[%199] : memref<8xi32, #tpu.memory_space<smem>>
    %201 = arith.index_cast %200 : i32 to index
    %c0_51 = arith.constant 0 : index
    %202 = vector.load %arg3[%201, %c0_51] : memref<24x128xf32, #tpu.memory_space<vmem>>, vector<1x128xf32>
    %c3_i32_52 = arith.constant 3 : i32
    %203 = arith.muli %198, %c3_i32_52 : i32
    %204 = arith.index_cast %203 : i32 to index
    %205 = memref.load %arg1[%204] : memref<24xi32, #tpu.memory_space<smem>>
    %206 = arith.index_cast %205 : i32 to index
    %c0_53 = arith.constant 0 : index
    %207 = vector.load %arg3[%206, %c0_53] : memref<24x128xf32, #tpu.memory_space<vmem>>, vector<1x128xf32>
    %c1_i32_54 = arith.constant 1 : i32
    %208 = arith.addi %203, %c1_i32_54 : i32
    %209 = arith.index_cast %208 : i32 to index
    %210 = memref.load %arg1[%209] : memref<24xi32, #tpu.memory_space<smem>>
    %211 = arith.index_cast %210 : i32 to index
    %c0_55 = arith.constant 0 : index
    %212 = vector.load %arg3[%211, %c0_55] : memref<24x128xf32, #tpu.memory_space<vmem>>, vector<1x128xf32>
    %213 = arith.addf %207, %212 : vector<1x128xf32>
    %c2_i32_56 = arith.constant 2 : i32
    %214 = arith.addi %203, %c2_i32_56 : i32
    %215 = arith.index_cast %214 : i32 to index
    %216 = memref.load %arg1[%215] : memref<24xi32, #tpu.memory_space<smem>>
    %217 = arith.index_cast %216 : i32 to index
    %c0_57 = arith.constant 0 : index
    %218 = vector.load %arg3[%217, %c0_57] : memref<24x128xf32, #tpu.memory_space<vmem>>, vector<1x128xf32>
    %219 = arith.addf %213, %218 : vector<1x128xf32>
    %220 = vector.shape_cast %219 : vector<1x128xf32> to vector<1x128xf32>
    %221 = vector.broadcast %220 : vector<1x128xf32> to vector<8x128xf32>
    %222 = arith.select %16, %221, %193 : vector<8x128xi1>, vector<8x128xf32>
    %223 = vector.shape_cast %202 : vector<1x128xf32> to vector<1x128xf32>
    %224 = vector.broadcast %223 : vector<1x128xf32> to vector<8x128xf32>
    %225 = arith.select %16, %224, %196 : vector<8x128xi1>, vector<8x128xf32>
    %226 = arith.addi %1, %20 : i32
    %c7_i32_58 = arith.constant 7 : i32
    %227 = arith.addi %226, %c7_i32_58 : i32
    %228 = arith.index_cast %227 : i32 to index
    %229 = memref.load %arg2[%228] : memref<8xi32, #tpu.memory_space<smem>>
    %230 = arith.index_cast %229 : i32 to index
    %c0_59 = arith.constant 0 : index
    %231 = vector.load %arg3[%230, %c0_59] : memref<24x128xf32, #tpu.memory_space<vmem>>, vector<1x128xf32>
    %c3_i32_60 = arith.constant 3 : i32
    %232 = arith.muli %227, %c3_i32_60 : i32
    %233 = arith.index_cast %232 : i32 to index
    %234 = memref.load %arg1[%233] : memref<24xi32, #tpu.memory_space<smem>>
    %235 = arith.index_cast %234 : i32 to index
    %c0_61 = arith.constant 0 : index
    %236 = vector.load %arg3[%235, %c0_61] : memref<24x128xf32, #tpu.memory_space<vmem>>, vector<1x128xf32>
    %c1_i32_62 = arith.constant 1 : i32
    %237 = arith.addi %232, %c1_i32_62 : i32
    %238 = arith.index_cast %237 : i32 to index
    %239 = memref.load %arg1[%238] : memref<24xi32, #tpu.memory_space<smem>>
    %240 = arith.index_cast %239 : i32 to index
    %c0_63 = arith.constant 0 : index
    %241 = vector.load %arg3[%240, %c0_63] : memref<24x128xf32, #tpu.memory_space<vmem>>, vector<1x128xf32>
    %242 = arith.addf %236, %241 : vector<1x128xf32>
    %c2_i32_64 = arith.constant 2 : i32
    %243 = arith.addi %232, %c2_i32_64 : i32
    %244 = arith.index_cast %243 : i32 to index
    %245 = memref.load %arg1[%244] : memref<24xi32, #tpu.memory_space<smem>>
    %246 = arith.index_cast %245 : i32 to index
    %c0_65 = arith.constant 0 : index
    %247 = vector.load %arg3[%246, %c0_65] : memref<24x128xf32, #tpu.memory_space<vmem>>, vector<1x128xf32>
    %248 = arith.addf %242, %247 : vector<1x128xf32>
    %249 = vector.shape_cast %248 : vector<1x128xf32> to vector<1x128xf32>
    %250 = vector.broadcast %249 : vector<1x128xf32> to vector<8x128xf32>
    %251 = arith.select %18, %250, %222 : vector<8x128xi1>, vector<8x128xf32>
    %252 = vector.shape_cast %231 : vector<1x128xf32> to vector<1x128xf32>
    %253 = vector.broadcast %252 : vector<1x128xf32> to vector<8x128xf32>
    %254 = arith.select %18, %253, %225 : vector<8x128xi1>, vector<8x128xf32>
    %255 = arith.index_cast %20 : i32 to index
    %c0_66 = arith.constant 0 : index
    %256 = vector.load %arg7[%255, %c0_66] : memref<8x256xf32, #tpu.memory_space<vmem>>, vector<8x128xf32>
    tpu.vector_store %arg7[%255, %c0_66], %251 {strides = array<i32>} : memref<8x256xf32, #tpu.memory_space<vmem>>, vector<8x128xf32>,
    %257 = arith.index_cast %20 : i32 to index
    %c128 = arith.constant 128 : index
    %258 = vector.load %arg7[%257, %c128] : memref<8x256xf32, #tpu.memory_space<vmem>>, vector<8x128xf32>
    tpu.vector_store %arg7[%257, %c128], %254 {strides = array<i32>} : memref<8x256xf32, #tpu.memory_space<vmem>>, vector<8x128xf32>,
    %c1_i32_67 = arith.constant 1 : i32
    %c0_68 = arith.constant 0 : index
    %c0_69 = arith.constant 0 : index
    %259 = vector.load %arg7[%c0_68, %c0_69] : memref<8x256xf32, #tpu.memory_space<vmem>>, vector<8x256xf32>
    %c0_70 = arith.constant 0 : index
    %c0_71 = arith.constant 0 : index
    %260 = vector.load %arg4[%c0_70, %c0_71] : memref<256x128xf32, #tpu.memory_space<vmem>>, vector<256x128xf32>
    %cst_72 = arith.constant dense<0.000000e+00> : vector<8x128xf32>
    %261 = tpu.matmul %259, %260, %cst_72 {dimension_numbers = #tpu.dot_dimension_numbers<[1], [0], [0], [1], [0, 0, 1, 1], [], []>} : vector<8x256xf32>, vector<256x128xf32>, vector<8x128xf32> -> vector<8x128xf32>
    %c0_73 = arith.constant 0 : index
    %c0_74 = arith.constant 0 : index
    %262 = vector.load %arg5[%c0_73, %c0_74] : memref<1x128xf32, #tpu.memory_space<vmem>>, vector<1x128xf32>
    %263 = vector.broadcast %262 : vector<1x128xf32> to vector<8x128xf32>
    %264 = arith.addf %261, %263 : vector<8x128xf32>
    %c0_75 = arith.constant 0 : index
    %c0_76 = arith.constant 0 : index
    %265 = vector.load %arg6[%c0_75, %c0_76] : memref<8x128xf32, #tpu.memory_space<vmem>>, vector<8x128xf32>
    tpu.vector_store %arg6[%c0_75, %c0_76], %264 {strides = array<i32>} : memref<8x128xf32, #tpu.memory_space<vmem>>, vector<8x128xf32>,
    return
  }
  func.func @transform_0(%arg0: i32, %arg1: memref<24xi32, #tpu.memory_space<smem>>, %arg2: memref<8xi32, #tpu.memory_space<smem>>) -> (i32, i32) {
    %c0_i32 = arith.constant 0 : i32
    %c0_i32_0 = arith.constant 0 : i32
    %c0_i32_1 = arith.constant 0 : i32
    return %c0_i32, %c0_i32_0 : i32, i32
  }
  func.func @transform_1(%arg0: i32, %arg1: memref<24xi32, #tpu.memory_space<smem>>, %arg2: memref<8xi32, #tpu.memory_space<smem>>) -> (i32, i32) {
    %c0_i32 = arith.constant 0 : i32
    %c0_i32_0 = arith.constant 0 : i32
    %c0_i32_1 = arith.constant 0 : i32
    return %c0_i32, %c0_i32_0 : i32, i32
  }
  func.func @transform_2(%arg0: i32, %arg1: memref<24xi32, #tpu.memory_space<smem>>, %arg2: memref<8xi32, #tpu.memory_space<smem>>) -> (i32, i32) {
    %c0_i32 = arith.constant 0 : i32
    %c0_i32_0 = arith.constant 0 : i32
    %c0_i32_1 = arith.constant 0 : i32
    return %c0_i32, %c0_i32_0 : i32, i32
  }
  func.func @transform_3(%arg0: i32, %arg1: memref<24xi32, #tpu.memory_space<smem>>, %arg2: memref<8xi32, #tpu.memory_space<smem>>) -> (i32, i32) {
    %c0_i32 = arith.constant 0 : i32
    %c0_i32_0 = arith.constant 0 : i32
    return %arg0, %c0_i32 : i32, i32
  }
}

</mosaic_0001>

<bundles_post_ra>
// kernel: tpu_custom_call.1
= control target key start
LH: loop header
LB: loop body
LE: loop exit
PB: predicated region body
PF: predicated region fallthrough
CT: control target
= control target key end

     0   :  { %s896_s0 = inlined_call_operand.hbm [shape: s32[24], index: 0, kind: input, shape index: {}]   ;;  %s897_s2 = inlined_call_operand.hbm [shape: f32[24,128], index: 2, kind: input, shape index: {}]   ;;  %s898_s3 = inlined_call_operand.hbm [shape: f32[256,128], index: 3, kind: input, shape index: {}]   ;;  %s899_s4 = inlined_call_operand.vmem [shape: f32[1,128], index: 4, kind: input, shape index: {}]   ;;  %s900_s5 = inlined_call_operand.hbm [shape: f32[8,128], index: 5, kind: output, shape index: {}]   ;;  %s901_s1 = inlined_call_operand.vmem [shape: s32[8], index: 1, kind: input, shape index: {}]  }
   0x1   :  { %s566_s20 = scalar_lea.hbm %s896_s0, 16 }
   0x2   :  { %p567_p0 = scmp.ne.s32.totalorder %s896_s0, %s566_s20  ;;  %p570_p1 = scmp.lt.u32.totalorder %s566_s20, %s896_s0 }
   0x4   :  { %p572_p2 = pnand %p570_p1, %p567_p0 }
   0x6   :  { %575 = shalt.err (!%p572_p2)  }
   0x7   :  { %s662_s25 = smov [#allocation4]   ;;  %s12_s30 = sshll.u32 %s901_s1, 4  ;;  %s13_s30 = int_to_ptr.vmem [resolvable:$true] %s12_s30 }
   0x8   :  { %11 = dma.hbm_to_smem %s896_s0, 16, %s662_s25, [#allocation3] }
   0x9   :  { %s576_s6 = scalar_lea.vmem %s13_s30, 16  ;;  %p581_p4 = scmp.lt.s32.totalorder %s13_s30, %s13_s30 }
   0xa   :  { %p577_p3 = scmp.ne.s32.totalorder %s13_s30, %s576_s6  ;;  %p582_p5 = scmp.lt.s32.totalorder %s576_s6, %s576_s6 }
   0xc   :  { %p583_p6 = por %p582_p5, %p581_p4 }
   0xe   :  { %p584_p7 = pnand %p583_p6, %p577_p3 }
  0x10   :  { %587 = shalt.err (!%p584_p7)  }
  0x11   :  { %s663_s7 = smov [#allocation5]  }
  0x12   :  { %15 = dma.vmem_to_smem %s13_s30, 16, %s663_s7, [#allocation3] }
  0x13   :  { %654 = dma.done.wait [#allocation3], 32 }
  0x14   :  { %655 = vsyncadd [#allocation3], 4294967264 }
  0x15   :  { %17 = sfence }
  0x16   :  { %18 = vsyncpa [#allocation7], 0 }
  0x17   :  { %19 = vsyncpa [#allocation10], 0 }
  0x18   :  { %20 = vsyncpa [#allocation8], 0  ;;  %s664_s0 = smov [#allocation6]   ;;  %s588_s10 = scalar_lea.hbm %s897_s2, 384 }
  0x19   :  { %s26_s8 = sshll.u32 %s664_s0, 4  ;;  %p589_p8 = scmp.ne.s32.totalorder %s897_s2, %s588_s10  ;;  %s27_s8 = int_to_ptr.vmem [resolvable:$true] %s26_s8 }
  0x1a   :  { %p592_p9 = scmp.lt.u32.totalorder %s588_s10, %s897_s2 }
  0x1c   :  { %p594_p10 = pnand %p592_p9, %p589_p8 }
  0x1e   :  { %597 = shalt.err (!%p594_p10)
}
  0x1f   :  { %s598_s15 = scalar_lea.vmem %s27_s8, 384  ;;  %p603_p12 = scmp.lt.s32.totalorder %s27_s8, %s27_s8 }
  0x20   :  { %p599_p11 = scmp.ne.s32.totalorder %s27_s8, %s598_s15  ;;  %p604_p13 = scmp.lt.s32.totalorder %s598_s15, %s598_s15 }
  0x22   :  { %p605_p0 = por %p604_p13, %p603_p12 }
  0x24   :  { %p606_p1 = pnand %p605_p0, %p599_p11 }
  0x26   :  { %609 = shalt.err (!%p606_p1)
}
  0x27   :  { %s665_s16 = smov 128   ;;  %s666_s17 = smov 8  }
  0x28   :  { %32 = dma.hbm_to_vmem [thread:$0]  %s897_s2, 384, %s27_s8, [#allocation7], %s665_s16, %s665_s16, %s666_s17  }
  0x29   :  { %s667_s20 = smov [#allocation9]   ;;  %s610_s24 = scalar_lea.hbm %s898_s3, 4096 }
  0x2a   :  { %s38_s21 = sshll.u32 %s667_s20, 4  ;;  %p611_p2 = scmp.ne.s32.totalorder %s898_s3, %s610_s24  ;;  %s39_s21 = int_to_ptr.vmem [resolvable:$true] %s38_s21 }
  0x2b   :  { %p614_p3 = scmp.lt.u32.totalorder %s610_s24, %s898_s3 }
  0x2d   :  { %p616_p4 = pnand %p614_p3, %p611_p2 }
  0x2f   :  { %619 = shalt.err (!%p616_p4)
}
  0x30   :  { %s620_s29 = scalar_lea.vmem %s39_s21, 4096  ;;  %p625_p6 = scmp.lt.s32.totalorder %s39_s21, %s39_s21 }
  0x31   :  { %p621_p5 = scmp.ne.s32.totalorder %s39_s21, %s620_s29  ;;  %p626_p7 = scmp.lt.s32.totalorder %s620_s29, %s620_s29 }
  0x33   :  { %p627_p8 = por %p626_p7, %p625_p6 }
  0x35   :  { %p628_p9 = pnand %p627_p8, %p621_p5 }
  0x37   :  { %631 = shalt.err (!%p628_p9)
}
  0x38   :  { %44 = dma.hbm_to_vmem [thread:$0]  %s898_s3, 4096, %s39_s21, [#allocation10], %s665_s16, %s665_s16, %s666_s17  }
  0x39   :  { %656 = dma.done.wait [#allocation7], 384  }
  0x3a   :  { %657 = vsyncadd [#allocation7], 4294966912 }
  0x3b   :  { %658 = dma.done.wait [#allocation10], 4096  }
  0x3c   :  { %659 = vsyncadd [#allocation10], 4294963200  ;;  %s738_s6 = sld [smem:[#allocation5]]  ;;  %s740_s7 = sld [smem:[#allocation5 + $0x1]]  ;;  %v54_v0 = vlaneseq  ;;  %v311_v1 = vld [vmem:[#allocation9 + $0x80] sm:$0xff]  ;;  %v312_v2 = vld [vmem:[#allocation9 + $0x88] sm:$0xff] }
  0x3d   :  { %s742_s0 = sld [smem:[#allocation5 + $0x2]]  ;;  %s744_s8 = sld [smem:[#allocation5 + $0x3]]  ;;  %v295_v3 = vld [vmem:[#allocation9] sm:$0xff]  ;;  %v527_v4 = vpack.c.bf16 %v312_v2, %v311_v1  ;;  %v296_v5 = vld [vmem:[#allocation9 + $0x8] sm:$0xff]  ;;  %v313_v6 = vld [vmem:[#allocation9 + $0x90] sm:$0xff] }
  0x3e   :  { %s746_s1 = sld [smem:[#allocation5 + $0x4]]  ;;  %s748_s9 = sld [smem:[#allocation5 + $0x5]]  ;;  %v314_v7 = vld [vmem:[#allocation9 + $0x98] sm:$0xff]  ;;  %v529_v8 = vpack.c.bf16 %v296_v5, %v295_v3  ;;  %v297_v10 = vld [vmem:[#allocation9 + $0x10] sm:$0xff]  ;;  %v315_v12 = vld [vmem:[#allocation9 + $0xa0] sm:$0xff]  ;;  %v758_v14 = vshrl.u32 %v54_v0, 7 }
  0x3f   :  { %s750_s10 = sld [smem:[#allocation5 + $0x6]]  ;;  %s752_s3 = sld [smem:[#allocation5 + $0x7]]  ;;  %v531_v9 = vpack.c.bf16 %v314_v7, %v313_v6  ;;  %v298_v11 = vld [vmem:[#allocation9 + $0x18] sm:$0xff]  ;;  %528 = vmatprep.subr.bf16.mxu0 %v527_v4  ;;  %v316_v13 = vld [vmem:[#allocation9 + $0xa8] sm:$0xff]  ;;  %v299_v17 = vld [vmem:[#allocation9 + $0x20] sm:$0xff] }
  0x40   :  { %s754_s11 = sld [smem:[#allocation4]]  ;;  %s756_s12 = sld [smem:[#allocation4 + $0x1]]  ;;  %530 = vmatpush3.bf16.msra.mxu0 %v529_v8  ;;  %v533_v15 = vpack.c.bf16 %v298_v11, %v297_v10  ;;  %v535_v16 = vpack.c.bf16 %v316_v13, %v315_v12  ;;  %v300_v18 = vld [vmem:[#allocation9 + $0x28] sm:$0xff]  ;;  %vm56_vm0 = vcmp.eq.s32.totalorder %v758_v14, 0  ;;  %v317_v19 = vld [vmem:[#allocation9 + $0xb0] sm:$0xff]  ;;  %v318_v20 = vld [vmem:[#allocation9 + $0xb8] sm:$0xff] }
  0x41   :  { %s760_s13 = sld [smem:[#allocation4 + $0x2]]  ;;  %s762_s14 = sld [smem:[#allocation4 + $0x3]]  ;;  %532 = vmatprep.subr.bf16.mxu0 %v531_v9  ;;  %vm57_vm1 = vcmp.eq.s32.totalorder %v758_v14, 1  ;;  %vm58_vm2 = vcmp.eq.s32.totalorder %v758_v14, 2  ;;  %vm59_vm3 = vcmp.eq.s32.totalorder %v758_v14, 3  ;;  %vm60_vm4 = vcmp.eq.s32.totalorder %v758_v14, 4 }
  0x42   :  { %s769_s15 = sld [smem:[#allocation4 + $0x4]]  ;;  %s771_s16 = sld [smem:[#allocation4 + $0x5]]  ;;  %v537_v21 = vpack.c.bf16 %v300_v18, %v299_v17  ;;  %vm61_vm5 = vcmp.eq.s32.totalorder %v758_v14, 5  ;;  %vm62_vm6 = vcmp.eq.s32.totalorder %v758_v14, 6  ;;  %vm63_vm7 = vcmp.eq.s32.totalorder %v758_v14, 7  ;;  %v301_v23 = vld [vmem:[#allocation9 + $0x30] sm:$0xff] }
  0x43   :  { %s776_s17 = sld [smem:[#allocation4 + $0x6]]  ;;  %v539_v22 = vpack.c.bf16 %v318_v20, %v317_v19  ;;  %v302_v24 = vld [vmem:[#allocation9 + $0x38] sm:$0xff]  ;;  %v779_v25 = vsub.s32 0, %v758_v14  ;;  %s781_s18 = sld [smem:[#allocation4 + $0x7]]  ;;  %v319_v26 = vld [vmem:[#allocation9 + $0xc0] sm:$0xff]  ;;  %v320_v27 = vld [vmem:[#allocation9 + $0xc8] sm:$0xff] }
  0x44   :  { %534 = vmatpush3.bf16.msra.mxu0 %v533_v15  ;;  %s66_s19 = scalar_lea.vmem [#allocation6], %s738_s6  ;;  %v784_v29 = vld [vmem:[#allocation9 + $0x40] sm:$0xff]  ;;  %v786_v30 = vld [vmem:[#allocation9 + $0x48] sm:$0xff]  ;;  %s94_s20 = scalar_lea.vmem [#allocation6], %s740_s7  ;;  %v541_v34 = vpack.c.bf16 %v302_v24, %v301_v23  ;;  %v321_v35 = vld [vmem:[#allocation9 + $0xd0] sm:$0xff]  ;;  %v543_v40 = vpack.c.bf16 %v320_v27, %v319_v26 }
  0x45   :  { %536 = vmatprep.subr.bf16.mxu0 %v535_v16  ;;  %v455_v28 = vld [vmem:[%s66_s19] ss:$0 sm:$0xff]  ;;  %s122_s21 = scalar_lea.vmem [#allocation6], %s742_s0  ;;  %v322_v36 = vld [vmem:[#allocation9 + $0xd8] sm:$0xff]  ;;  %s150_s22 = scalar_lea.vmem [#allocation6], %s744_s8  ;;  %v305_v49 = vld [vmem:[#allocation9 + $0x50] sm:$0xff]  ;;  %v545_v54 = vpack.c.bf16 %v786_v30, %v784_v29 }
  0x46   :  { %v91_v31 = vsel %vm56_vm0, %v455_v28, 0.0  ;;  %v460_v32 = vld [vmem:[%s94_s20] ss:$0 sm:$0xff]  ;;  %s178_s23 = scalar_lea.vmem [#allocation6], %s746_s1  ;;  %s206_s24 = scalar_lea.vmem [#allocation6], %s748_s9  ;;  %v306_v50 = vld [vmem:[#allocation9 + $0x58] sm:$0xff]  ;;  %v547_v58 = vpack.c.bf16 %v322_v36, %v321_v35 }
  0x47   :  { %v465_v33 = vld [vmem:[%s122_s21] ss:$0 sm:$0xff]  ;;  %v119_v37 = vsel %vm57_vm1, %v460_v32, %v91_v31  ;;  %s234_s25 = scalar_lea.vmem [#allocation6], %s750_s10  ;;  %s70_s26 = scalar_lea.vmem [#allocation6], %s754_s11  ;;  %v323_v59 = vld [vmem:[#allocation9 + $0xe0] sm:$0xff]  ;;  %v549_v4 = vpack.c.bf16 %v306_v50, %v305_v49  ;;  %v325_v10 = vld [vmem:[#allocation9 + $0xf0] sm:$0xff] }
  0x48   :  { %538 = vmatpush3.bf16.msra.mxu0 %v537_v21  ;;  %v470_v38 = vld [vmem:[%s150_s22] ss:$0 sm:$0xff]  ;;  %v147_v41 = vsel %vm58_vm2, %v465_v33, %v119_v37  ;;  %s74_s27 = scalar_lea.vmem [#allocation6], %s756_s12  ;;  %s79_s28 = scalar_lea.vmem [#allocation6], %s760_s13  ;;  %v307_v7 = vld [vmem:[#allocation9 + $0x60] sm:$0xff]  ;;  %v326_v11 = vld [vmem:[#allocation9 + $0xf8] sm:$0xff] }
  0x49   :  { %v475_v39 = vld [vmem:[%s178_s23] ss:$0 sm:$0xff]  ;;  %540 = vmatprep.subr.bf16.mxu0 %v539_v22  ;;  %v175_v45 = vsel %vm59_vm3, %v470_v38, %v147_v41  ;;  %s98_s29 = scalar_lea.vmem [#allocation6], %s762_s14  ;;  %s262_s2 = scalar_lea.vmem [#allocation6], %s752_s3  ;;  %v309_v12 = vld [vmem:[#allocation9 + $0x70] sm:$0xff]  ;;  %v310_v16 = vld [vmem:[#allocation9 + $0x78] sm:$0xff]  ;;  %v555_v19 = vpack.c.bf16 %v326_v11, %v325_v10 }
  0x4a   :  { %v480_v42 = vld [vmem:[%s206_s24] ss:$0 sm:$0xff]  ;;  %v203_v51 = vsel %vm60_vm4, %v475_v39, %v175_v45  ;;  %s102_s30 = scalar_lea.vmem [#allocation6], %s769_s15  ;;  %s107_s6 = scalar_lea.vmem [#allocation6], %s771_s16  ;;  %v557_v31 = vpack.c.bf16 %v310_v16, %v309_v12 }
  0x4b   :  { %v485_v43 = vld [vmem:[%s234_s25] ss:$0 sm:$0xff]  ;;  %v231_v55 = vsel %vm61_vm5, %v480_v42, %v203_v51  ;;  %s126_s7 = scalar_lea.vmem [#allocation6], %s776_s17  ;;  %s818_s0 = sld [smem:[#allocation4 + $0x8]] }
  0x4c   :  { %v71_v44 = vld [vmem:[%s70_s26] sm:$0x1]  ;;  %542 = vmatpush3.bf16.msra.mxu0 %v541_v34  ;;  %v259_v61 = vsel %vm62_vm6, %v485_v43, %v231_v55  ;;  %s130_s8 = scalar_lea.vmem [#allocation6], %s781_s18  ;;  %s823_s1 = sld [smem:[#allocation4 + $0x9]] }
  0x4d   :  { %v75_v46 = vld [vmem:[%s74_s27] sm:$0x1]  ;;  %544 = vmatprep.subr.bf16.mxu0 %v543_v40  ;;  %s825_s9 = sld [smem:[#allocation4 + $0xa]]  ;;  %s827_s10 = sld [smem:[#allocation4 + $0xb]] }
  0x4e   :  { %v80_v47 = vld [vmem:[%s79_s28] sm:$0x1]  ;;  %v76_v53 = vadd.f32 %v75_v46, %v71_v44  ;;  %s829_s3 = sld [smem:[#allocation4 + $0xc]]  ;;  %s832_s11 = sld [smem:[#allocation4 + $0xd]] }
  0x4f   :  { %v99_v48 = vld [vmem:[%s98_s29] sm:$0x1]  ;;  %s834_s12 = sld [smem:[#allocation4 + $0xe]]  ;;  %s836_s13 = sld [smem:[#allocation4 + $0xf]] }
  0x50   :  { %v490_v52 = vld [vmem:[%s262_s2] ss:$0 sm:$0xff]  ;;  %v81_v62 = vadd.f32 %v80_v47, %v76_v53  ;;  %546 = vmatpush3.bf16.msra.mxu0 %v545_v54  ;;  %s838_s14 = sld [smem:[#allocation4 + $0x10]]  ;;  %s840_s15 = sld [smem:[#allocation4 + $0x11]] }
  0x51   :  { %v103_v56 = vld [vmem:[%s102_s30] sm:$0x1]  ;;  %v287_v1 = vsel %vm63_vm7, %v490_v52, %v259_v61  ;;  %548 = vmatprep.subr.bf16.mxu0 %v547_v58  ;;  %s842_s16 = sld [smem:[#allocation4 + $0x12]]  ;;  %s845_s17 = sld [smem:[#allocation4 + $0x13]] }
  0x52   :  { %v108_v57 = vld [vmem:[%s107_s6] sm:$0x1]  ;;  %v104_v63 = vadd.f32 %v103_v56, %v99_v48  ;;  %398 = vmatprep.mubr.f32.mxu0 %v287_v1  ;;  %v85_v5 = vrot.slane %v81_v62, %v779_v25  ;;  %s135_s18 = scalar_lea.vmem [#allocation6], %s818_s0  ;;  %s154_s19 = scalar_lea.vmem [#allocation6], %s823_s1 }
  0x53   :  { %v324_v60 = vld [vmem:[#allocation9 + $0xe8] sm:$0xff]  ;;  %s158_s20 = scalar_lea.vmem [#allocation6], %s825_s9  ;;  %s163_s21 = scalar_lea.vmem [#allocation6], %s827_s10 }
  0x54   :  { %v127_v0 = vld [vmem:[%s126_s7] sm:$0x1]  ;;  %v109_v3 = vadd.f32 %v108_v57, %v104_v63  ;;  %v551_v6 = vpack.c.bf16 %v324_v60, %v323_v59  ;;  %550 = vmatpush3.bf16.msra.mxu0 %v549_v4  ;;  %v86_v17 = vsel %vm56_vm0, %v85_v5, 0.0  ;;  %s182_s22 = scalar_lea.vmem [#allocation6], %s829_s3  ;;  %s186_s23 = scalar_lea.vmem [#allocation6], %s832_s11 }
  0x55   :  { %v131_v2 = vld [vmem:[%s130_s8] sm:$0x1]  ;;  %s191_s24 = scalar_lea.vmem [#allocation6], %s834_s12  ;;  %s210_s25 = scalar_lea.vmem [#allocation6], %s836_s13 }
  0x56   :  { %v308_v8 = vld [vmem:[#allocation9 + $0x68] sm:$0xff]  ;;  %v132_v9 = vadd.f32 %v131_v2, %v127_v0  ;;  %v113_v13 = vrot.slane %v109_v3, %v779_v25  ;;  %552 = vmatprep.subr.bf16.mxu0 %v551_v6  ;;  %s214_s26 = scalar_lea.vmem [#allocation6], %s838_s14  ;;  %s219_s27 = scalar_lea.vmem [#allocation6], %s840_s15 }
  0x57   :  { %v553_v15 = vpack.c.bf16 %v308_v8, %v307_v7  ;;  %v136_v18 = vld [vmem:[%s135_s18] sm:$0x1]  ;;  %s238_s28 = scalar_lea.vmem [#allocation6], %s842_s16  ;;  %s484_s29 = sld [smem:[#allocation4 + $0x14]] }
  0x58   :  { %v137_v20 = vadd.f32 %v136_v18, %v132_v9  ;;  %v155_v21 = vld [vmem:[%s154_s19] sm:$0x1]  ;;  %v114_v27 = vsel %vm57_vm1, %v113_v13, %v86_v17  ;;  %s487_s2 = sld [smem:[#allocation4 + $0x15]]  ;;  %s242_s30 = scalar_lea.vmem [#allocation6], %s845_s17 }
  0x59   :  { %v159_v22 = vld [vmem:[%s158_s20] sm:$0x1]  ;;  %554 = vmatpush3.bf16.msra.mxu0 %v553_v15  ;;  %s488_s6 = sld [smem:[#allocation4 + $0x16]]  ;;  %s489_s7 = sld [smem:[#allocation4 + $0x17]] }
  0x5a   :  { %v160_v23 = vadd.f32 %v159_v22, %v155_v21  ;;  %v164_v24 = vld [vmem:[%s163_s21] sm:$0x1]  ;;  %v141_v28 = vrot.slane %v137_v20, %v779_v25  ;;  %556 = vmatprep.subr.bf16.mxu0 %v555_v19  ;;  %s668_s11 = smov [#allocation11]  }
  0x5b   :  { %v183_v26 = vld [vmem:[%s182_s22] sm:$0x1]  ;;  %s411_s12 = sshll.u32 %s668_s11, 4  ;;  %s412_s12 = int_to_ptr.vmem [resolvable:$true] %s411_s12 }
  0x5c   :  { %v187_v29 = vld [vmem:[%s186_s23] sm:$0x1]  ;;  %v165_v32 = vadd.f32 %v164_v24, %v160_v23  ;;  %v142_v38 = vsel %vm58_vm2, %v141_v28, %v114_v27  ;;  %s632_s13 = scalar_lea.vmem %s412_s12, 128  ;;  %p637_p11 = scmp.lt.s32.totalorder %s412_s12, %s412_s12 }
  0x5d   :  { %v192_v30 = vld [vmem:[%s191_s24] sm:$0x1]  ;;  %v188_v33 = vadd.f32 %v187_v29, %v183_v26  ;;  %558 = vmatpush3.bf16.msra.mxu0 %v557_v31  ;;  %s247_s0 = scalar_lea.vmem [#allocation6], %s484_s29  ;;  %p633_p10 = scmp.ne.s32.totalorder %s412_s12, %s632_s13 }
  0x5e   :  { %v211_v34 = vld [vmem:[%s210_s25] sm:$0x1]  ;;  %v169_v39 = vrot.slane %v165_v32, %v779_v25  ;;  %s266_s8 = scalar_lea.vmem [#allocation6], %s487_s2  ;;  %p638_p12 = scmp.lt.s32.totalorder %s632_s13, %s632_s13 }
  0x5f   :  { %v215_v35 = vld [vmem:[%s214_s26] sm:$0x1]  ;;  %v193_v40 = vadd.f32 %v192_v30, %v188_v33  ;;  %s270_s1 = scalar_lea.vmem [#allocation6], %s488_s6  ;;  %s275_s9 = scalar_lea.vmem [#allocation6], %s489_s7 }
  0x60   :  { %v216_v36 = vadd.f32 %v215_v35, %v211_v34  ;;  %v220_v37 = vld [vmem:[%s219_s27] sm:$0x1]  ;;  %v170_v45 = vsel %vm59_vm3, %v169_v39, %v142_v38  ;;  %p639_p13 = por %p638_p12, %p637_p11 }
  0x61   :  { %v239_v41 = vld [vmem:[%s238_s28] sm:$0x1]  ;;  %v197_v44 = vrot.slane %v193_v40, %v779_v25 }
  0x62   :  { %v221_v42 = vadd.f32 %v220_v37, %v216_v36  ;;  %v243_v43 = vld [vmem:[%s242_s30] sm:$0x1]  ;;  %p640_p0 = pnand %p639_p13, %p633_p10 }
  0x63   :  { %v244_v46 = vadd.f32 %v243_v43, %v239_v41  ;;  %v198_v48 = vsel %vm60_vm4, %v197_v44, %v170_v45  ;;  %v248_v49 = vld [vmem:[%s247_s0] sm:$0x1] }
  0x64   :  { %v225_v47 = vrot.slane %v221_v42, %v779_v25  ;;  %v267_v50 = vld [vmem:[%s266_s8] sm:$0x1] }
  0x65   :  { %v249_v51 = vadd.f32 %v248_v49, %v244_v46  ;;  %v271_v52 = vld [vmem:[%s270_s1] sm:$0x1] }
  0x66   :  { %v276_v53 = vld [vmem:[%s275_s9] sm:$0x1]  ;;  %v226_v54 = vsel %vm61_vm5, %v225_v47, %v198_v48  ;;  %v272_v55 = vadd.f32 %v271_v52, %v267_v50 }
  0x67   :  { %v253_v56 = vrot.slane %v249_v51, %v779_v25  ;;  %v491_v62 = vld [vmem:[%s899_s4] ss:$0 sm:$0xff] }
  0x68   :  { %v277_v57 = vadd.f32 %v276_v53, %v272_v55 }
  0x69   :  { %v254_v58 = vsel %vm62_vm6, %v253_v56, %v226_v54 }
  0x6a   :  { %v281_v59 = vrot.slane %v277_v57, %v779_v25 }
  0x6c   :  { %v282_v60 = vsel %vm63_vm7, %v281_v59, %v254_v58 }
  0x6d   :  { %399 = vmatmul.mubr.f32.vlgmr.msra.gmra.mrb[0].mxu0 %v282_v60 }
 0x140   :  { %v524_v61 = vpop.f32.mrb[0].mxu0 }
 0x141   :  { %v525_v63 = vpop.f32.mrb[1].mxu0 }
 0x142   :  { %v526_v0 = vadd.f32 %v525_v63, %v524_v61 }
 0x144   :  { %v401_v1 = vadd.f32 %v526_v0, %v491_v62 }
 0x146   :  { %404 = vst [vmem:[#allocation11] sm:$0xff] %v401_v1 }
 0x147   :  { %643 = shalt.err (!%p640_p0)
}
 0x148   :  { %s644_s16 = scalar_lea.hbm %s900_s5, 128 }
 0x149   :  { %p645_p1 = scmp.ne.s32.totalorder %s900_s5, %s644_s16  ;;  %p648_p2 = scmp.lt.u32.totalorder %s644_s16, %s900_s5 }
 0x14b   :  { %p650_p3 = pnand %p648_p2, %p645_p1 }
 0x14d   :  { %653 = shalt.err (!%p650_p3)
}
 0x14e   :  { %414 = dma.vmem_to_hbm [thread:$0]  %s412_s12, 128, %s900_s5, [#allocation8]  }
 0x14f   :  { %660 = dma.done.wait [#allocation8], 128  }
 0x150   :  { %661 = vsyncadd [#allocation8], 4294967168 }
 0x151   :  { %418 = vsyncpa [#allocation7], 1 }
 0x152   :  { %419 = vsyncpa [#allocation10], 1 }
 0x153   :  { %420 = vsyncpa [#allocation8], 1 }

</bundles_post_ra>
